<compile_context>
chip_gen: v6e
topology: v6e:2x2x1
jax: 0.10.0
libtpu: 0.0.40
codegen_flags: <defaults>
</compile_context>

<pallas_src>
import jax
import jax.numpy as jnp
from jax.experimental import pallas as pl
from jax.experimental.pallas import tpu as pltpu

_CHUNK_MIN_BYTES = 4 * 1024 * 1024   # only split the DMA for copies >= 4 MiB
_MAX_CHUNKS = 8


# ---------------------------------------------------------------------------
# Kernels
# ---------------------------------------------------------------------------
def _make_copy_kernel(chunks):
    """Build an HBM->HBM copy kernel.

    chunks=None  -> single whole-array DMA, scalar DMA semaphore.
    chunks=[(start, size), ...] -> K concurrent DMAs along the leading axis,
    one semaphore per chunk (start all, then wait all).
    """
    if chunks is None:
        def kernel(x_hbm_ref, o_hbm_ref, copy_sem):
            cp = pltpu.make_async_copy(x_hbm_ref, o_hbm_ref, copy_sem)
            cp.start()
            cp.wait()
        return kernel

    def kernel(x_hbm_ref, o_hbm_ref, copy_sems):
        cps = []
        for i, (start, size) in enumerate(chunks):          # static Python loop
            cp = pltpu.make_async_copy(
                x_hbm_ref.at[pl.ds(start, size)],
                o_hbm_ref.at[pl.ds(start, size)],
                copy_sems.at[i],
            )
            cp.start()                                       # issue all DMAs first
            cps.append(cp)
        for cp in cps:                                       # then wait on all
            cp.wait()
    return kernel


def _identity_alias_kernel(x_hbm_ref, o_hbm_ref):
    # Output aliases the input buffer (input_output_aliases={0: 0}); no data
    # movement.  touch() keeps a read+write dep so the body is not DCE'd.
    pltpu.touch(o_hbm_ref)


# ---------------------------------------------------------------------------
# Wrappers
# ---------------------------------------------------------------------------
def _identity_copy(x: jax.Array, num_chunks=None) -> jax.Array:
    """Materialized copy: single (or K-way chunked) whole-array HBM->HBM DMA."""
    n_bytes = x.size * x.dtype.itemsize
    lead = x.shape[0] if x.ndim >= 1 else 1

    if num_chunks is None:
        if lead >= 2 and n_bytes >= _CHUNK_MIN_BYTES:
            num_chunks = min(_MAX_CHUNKS, lead, max(2, n_bytes // _CHUNK_MIN_BYTES))
        else:
            num_chunks = 1
    num_chunks = int(max(1, min(num_chunks, lead)))

    if num_chunks == 1:
        chunks = None
        sem_shape = ()
    else:
        base, rem = divmod(lead, num_chunks)
        chunks, start = [], 0
        for i in range(num_chunks):
            size = base + (1 if i < rem else 0)
            chunks.append((start, size))
            start += size
        sem_shape = (num_chunks,)

    return pl.pallas_call(
        _make_copy_kernel(chunks),
        out_shape=jax.ShapeDtypeStruct(x.shape, x.dtype),
        in_specs=[pl.BlockSpec(memory_space=pl.ANY)],    # raw HBM ref, no auto-DMA
        out_specs=pl.BlockSpec(memory_space=pl.ANY),     # raw HBM ref, no auto-DMA
        scratch_shapes=[pltpu.SemaphoreType.DMA(sem_shape)],
        # Memory-bound copy: 1 read + 1 write of the whole array; lets XLA
        # schedule this custom call sensibly inside a larger jit.
        cost_estimate=pl.CostEstimate(
            flops=0, transcendentals=0, bytes_accessed=2 * n_bytes),
    )(x)


def _identity_donate(x: jax.Array) -> jax.Array:
    """Donation path: output buffer aliases the (donated) input buffer.

    Only worthwhile when the caller donates `x` at jit level
    (jax.jit(..., donate_argnums=...)); otherwise XLA copies upstream.
    """
    return pl.pallas_call(
        _identity_alias_kernel,
        out_shape=jax.ShapeDtypeStruct(x.shape, x.dtype),
        in_specs=[pl.BlockSpec(memory_space=pl.ANY)],
        out_specs=pl.BlockSpec(memory_space=pl.ANY),
        input_output_aliases={0: 0},
        compiler_params=pltpu.CompilerParams(has_side_effects=True),
    )(x)


def identity(x: jax.Array, *, materialize: bool = False, donate: bool = False,
             num_chunks=None) -> jax.Array:
    """PointNet Identity.forward: returns `input`.

    Default: zero-copy (returns `x` itself — free alias, zero HBM traffic,
    no kernel launch).  Set `materialize=True` to force a fresh buffer via a
    single (or chunked, for multi-MiB arrays) HBM->HBM DMA; `donate=True`
    additionally aliases the output onto a caller-donated input buffer.
    """
    if not materialize:
        return x                       # exact module semantics, zero cost
    if x.size == 0:
        return x                       # nothing to copy; skip zero-byte DMA
    if donate:
        return _identity_donate(x)
    return _identity_copy(x, num_chunks=num_chunks)


# ---------------------------------------------------------------------------
# Self-test
# ---------------------------------------------------------------------------
if __name__ == "__main__":
    key = jax.random.PRNGKey(0)

    # Default path: zero-copy identity (no pallas_call, no HBM traffic).
    x = jax.random.normal(key, (2, 4, 16, 16), dtype=jnp.float32)
    y = jax.block_until_ready(identity(x))
    assert y.shape == x.shape and y.dtype == x.dtype
    assert bool(jnp.all(y == x))

    # Materialized copy: single whole-array HBM->HBM DMA (runs the kernel).
    y_copy = jax.block_until_ready(identity(x, materialize=True))
    assert y_copy.shape == x.shape and y_copy.dtype == x.dtype
    assert bool(jnp.all(y_copy == x))

    # Odd, non-(8,128)-aligned shape + narrow dtype: the HBM->HBM DMA path
    # needs no padding or wrapper reshapes, so this passes through bit-exact.
    x2 = jax.random.normal(key, (3, 5, 7), dtype=jnp.bfloat16)
    y2 = jax.block_until_ready(identity(x2, materialize=True))
    assert y2.shape == x2.shape and y2.dtype == x2.dtype
    assert bool(jnp.all(y2 == x2))

    # Chunked concurrent-DMA path, forced small so the test stays cheap
    # (in production it only engages for >= 4 MiB copies).
    x3 = jax.random.normal(key, (8, 4, 16, 16), dtype=jnp.float32)
    y3 = jax.block_until_ready(identity(x3, materialize=True, num_chunks=4))
    assert y3.shape == x3.shape and y3.dtype == x3.dtype
    assert bool(jnp.all(y3 == x3))

    print("KERNEL_OK")
</pallas_src>

<mosaic_0001>
module attributes {stable_mosaic.version = 11 : i64} {
  func.func @kernel(%arg0: memref<2x4x16x16xf32, #tpu.memory_space<any>>, %arg1: memref<2x4x16x16xf32, #tpu.memory_space<any>>, %arg2: memref<!tpu.dma_semaphore, #tpu.memory_space<semaphore_mem>>) attributes {dimension_semantics = [], scalar_prefetch = 0 : i64, scratch_operands = 1 : i64, tpu.core_type = #tpu.core_type<tc>} {
    tpu.enqueue_dma source(%arg0 : memref<2x4x16x16xf32, #tpu.memory_space<any>>) target(%arg1 : memref<2x4x16x16xf32, #tpu.memory_space<any>>) target_semaphore(%arg2 : memref<!tpu.dma_semaphore, #tpu.memory_space<semaphore_mem>>)
    tpu.wait_dma2 semaphore(%arg2 : memref<!tpu.dma_semaphore, #tpu.memory_space<semaphore_mem>>) src(%arg0 : memref<2x4x16x16xf32, #tpu.memory_space<any>>) dst(%arg1 : memref<2x4x16x16xf32, #tpu.memory_space<any>>)
    return
  }
}

</mosaic_0001>

<bundles_post_ra>
// kernel: tpu_custom_call.1
= control target key start
LH: loop header
LB: loop body
LE: loop exit
PB: predicated region body
PF: predicated region fallthrough
CT: control target
= control target key end

     0   :  { %s30_s6 = smov [#allocation2]   ;;  %s31_s7 = smov 131072   ;;  %s49_s0 = inlined_call_operand.hbm [shape: f32[2,4,16,16], index: 0, kind: input, shape index: {}]   ;;  %s50_s1 = inlined_call_operand.hbm [shape: f32[2,4,16,16], index: 1, kind: output, shape index: {}]  }
   0x1   :  { %s32_s8 = smov 0  }
   0x2   :  { %12 = dma.general %s49_s0, 2048, %s50_s1, %s30_s6, %s31_s7, [#allocation4], %s32_s8, 0  }
   0x3   :  { %28 = dma.done.wait [#allocation2], 2048 }
   0x4   :  { %29 = vsyncadd [#allocation2], 4294965248 }
   0x5   :  { %18 = vsyncmov [#allocation2] }
   0x8   :  { %s19_s13 = vpop.sfrf %18 }
   0x9   :  { %p24_p0 = scmp.ne.s32.totalorder %s19_s13, 0 }
   0xb   :  { %23 = shalt.err (%p24_p0)  }

</bundles_post_ra>
